<compile_context>
chip_gen: v5e
topology: v5e:2x2
jax: 0.10.0
libtpu: 0.0.40
codegen_flags: <defaults>
</compile_context>

<pallas_src>
import functools

import jax
import jax.numpy as jnp
import numpy as np
from jax.experimental import pallas as pl
from jax.experimental.pallas import tpu as pltpu  # noqa: F401  (kept for TPU backend import)


def _dyna_graph_kernel(emb_ref, noise_ref, wcat_ref, bcat_ref, o_ref, *, B, N, D, k, alpha):
    e = emb_ref[...].astype(jnp.float32)          # (B*N, D)
    wcat = wcat_ref[...].astype(jnp.float32)      # (D, 2D)  == [W1^T | W2^T]
    bcat = bcat_ref[...].astype(jnp.float32)      # (1, 2D)  == [b1 | b2]

    # Fused lin1|lin2: one MXU matmul over all batch rows, then tanh(alpha * .)
    h = jnp.tanh(alpha * (jnp.dot(e, wcat, preferred_element_type=jnp.float32) + bcat))
    v1 = h[:, :D]                                 # (B*N, D)
    v2 = h[:, D:]                                 # (B*N, D)

    # Contract on the feature dim -> x @ y^T without an explicit (XLU) transpose.
    dn = (((1,), (1,)), ((), ()))

    for b in range(B):                            # B is tiny and static -> unrolled
        v1b = v1[b * N:(b + 1) * N, :]            # (N, D) static slices
        v2b = v2[b * N:(b + 1) * N, :]
        m12 = jax.lax.dot_general(v1b, v2b, dn, preferred_element_type=jnp.float32)  # (N, N)
        m21 = jax.lax.dot_general(v2b, v1b, dn, preferred_element_type=jnp.float32)  # (N, N)
        adj = jnp.maximum(jnp.tanh(alpha * (m12 - m21)), 0.0)

        # Top-k per row of (adj + noise*0.01); noise makes row values distinct a.s.,
        # so "score >= k-th largest score" selects the same positions as topk+scatter.
        noisy = adj + 0.01 * noise_ref[b].astype(jnp.float32)
        cur = noisy
        thresh = None
        for _ in range(k):                        # small static k -> unrolled
            thresh = jnp.max(cur, axis=-1, keepdims=True)      # current row max
            cur = jnp.where(cur >= thresh, -jnp.inf, cur)       # drop it, find next
        o_ref[b] = jnp.where(noisy >= thresh, adj, 0.0).astype(o_ref.dtype)


def dyna_graph_forward(idx, emb, params, k, alpha, noise):
    """idx: (nnodes,) node ids (only its length is used, as in the PyTorch module).
    emb: (B, N, D). noise: (B, N, N) uniform[0,1) tie-break noise (torch.rand_like).
    Returns the masked dynamic adjacency (B, N, N)."""
    B, N, D = emb.shape
    assert idx.shape[0] == N, "idx length must equal number of nodes"
    assert 1 <= k <= N

    # Fuse the two Linear layers in the wrapper: pre-transposed weights side-by-side.
    wcat = jnp.concatenate([jnp.transpose(params['w1']), jnp.transpose(params['w2'])],
                           axis=1)                                  # (D, 2D)
    bcat = jnp.concatenate([params['b1'], params['b2']]).reshape(1, 2 * D)
    emb2d = emb.reshape(B * N, D)                                   # contiguous, free

    kernel = functools.partial(_dyna_graph_kernel, B=B, N=N, D=D, k=int(k),
                               alpha=float(alpha))

    # Single invocation, no grid: every operand fits comfortably in VMEM, so all
    # arrays are passed as full blocks and the whole forward is one fused pass.
    return pl.pallas_call(
        kernel,
        out_shape=jax.ShapeDtypeStruct((B, N, N), emb.dtype),
    )(emb2d, noise, wcat, bcat)


def dyna_graph_ref(emb, noise, params, k, alpha):
    """Pure-JAX reference mirroring the PyTorch forward (same noise array)."""
    hp = jax.lax.Precision.HIGHEST
    v1 = jnp.tanh(alpha * (jnp.einsum('bnd,od->bno', emb, params['w1'], precision=hp)
                           + params['b1']))
    v2 = jnp.tanh(alpha * (jnp.einsum('bnd,od->bno', emb, params['w2'], precision=hp)
                           + params['b2']))
    a = (jnp.einsum('bid,bjd->bij', v1, v2, precision=hp)
         - jnp.einsum('bid,bjd->bij', v2, v1, precision=hp))
    adj = jnp.maximum(jnp.tanh(alpha * a), 0.0)
    noisy = adj + 0.01 * noise
    _, top_idx = jax.lax.top_k(noisy, k)                    # (B, N, k) along last dim
    mask = jnp.max(jax.nn.one_hot(top_idx, adj.shape[-1], dtype=adj.dtype), axis=2)
    return adj * mask


if __name__ == "__main__":
    # Small shapes consistent with the module: emb is (batch, nnodes, dim)
    B, N, D = 2, 16, 32
    k_top, alpha = 4, 3.0

    key = jax.random.PRNGKey(0)
    k_emb, k_w1, k_b1, k_w2, k_b2, k_noise = jax.random.split(key, 6)

    emb = jax.random.normal(k_emb, (B, N, D), dtype=jnp.float32)
    idx = jnp.arange(N, dtype=jnp.int32)
    params = {
        'w1': 0.3 * jax.random.normal(k_w1, (D, D), jnp.float32),
        'b1': 0.1 * jax.random.normal(k_b1, (D,), jnp.float32),
        'w2': 0.3 * jax.random.normal(k_w2, (D, D), jnp.float32),
        'b2': 0.1 * jax.random.normal(k_b2, (D,), jnp.float32),
    }
    # torch.rand_like(adj) equivalent, generated once and shared with the reference.
    noise = jax.random.uniform(k_noise, (B, N, N), dtype=jnp.float32)

    out = dyna_graph_forward(idx, emb, params, k_top, alpha, noise)
    out = jax.block_until_ready(out)
    assert out.shape == (B, N, N)

    ref = dyna_graph_ref(emb, noise, params, k_top, alpha)
    np.testing.assert_allclose(np.asarray(out), np.asarray(ref), rtol=3e-5, atol=3e-5)

    print("KERNEL_OK")
</pallas_src>

<mosaic_0001>
module attributes {stable_mosaic.version = 11 : i64} {
  func.func @_dyna_graph_kernel(%arg0: memref<32x32xf32, #tpu.memory_space<vmem>>, %arg1: memref<2x16x16xf32, #tpu.memory_space<vmem>>, %arg2: memref<32x64xf32, #tpu.memory_space<vmem>>, %arg3: memref<1x64xf32, #tpu.memory_space<vmem>>, %arg4: memref<2x16x16xf32, #tpu.memory_space<vmem>>) attributes {dimension_semantics = [], scalar_prefetch = 0 : i64, scratch_operands = 0 : i64, tpu.core_type = #tpu.core_type<tc>} {
    %c0 = arith.constant 0 : index
    %c0_0 = arith.constant 0 : index
    %0 = vector.load %arg0[%c0, %c0_0] : memref<32x32xf32, #tpu.memory_space<vmem>>, vector<32x32xf32>
    %c0_1 = arith.constant 0 : index
    %c0_2 = arith.constant 0 : index
    %1 = vector.load %arg2[%c0_1, %c0_2] : memref<32x64xf32, #tpu.memory_space<vmem>>, vector<32x64xf32>
    %c0_3 = arith.constant 0 : index
    %c0_4 = arith.constant 0 : index
    %2 = vector.load %arg3[%c0_3, %c0_4] : memref<1x64xf32, #tpu.memory_space<vmem>>, vector<1x64xf32>
    %cst = arith.constant dense<0.000000e+00> : vector<32x64xf32>
    %3 = tpu.matmul %0, %1, %cst {dimension_numbers = #tpu.dot_dimension_numbers<[1], [0], [0], [1], [0, 0, 1, 1], [], []>} : vector<32x32xf32>, vector<32x64xf32>, vector<32x64xf32> -> vector<32x64xf32>
    %4 = vector.broadcast %2 : vector<1x64xf32> to vector<32x64xf32>
    %5 = arith.addf %3, %4 : vector<32x64xf32>
    %cst_5 = arith.constant 3.000000e+00 : f32
    %6 = vector.broadcast %cst_5 : f32 to vector<32x64xf32>
    %7 = arith.mulf %6, %5 : vector<32x64xf32>
    %8 = math.tanh %7 : vector<32x64xf32>
    %9 = vector.extract_strided_slice %8 {offsets = [0, 0], sizes = [32, 32], strides = [1, 1]} : vector<32x64xf32> to vector<32x32xf32>
    %10 = vector.extract_strided_slice %8 {offsets = [0, 32], sizes = [32, 32], strides = [1, 1]} : vector<32x64xf32> to vector<32x32xf32>
    %11 = vector.extract_strided_slice %9 {offsets = [0, 0], sizes = [16, 32], strides = [1, 1]} : vector<32x32xf32> to vector<16x32xf32>
    %12 = vector.extract_strided_slice %10 {offsets = [0, 0], sizes = [16, 32], strides = [1, 1]} : vector<32x32xf32> to vector<16x32xf32>
    %cst_6 = arith.constant dense<0.000000e+00> : vector<16x16xf32>
    %13 = tpu.matmul %11, %12, %cst_6 {dimension_numbers = #tpu.dot_dimension_numbers<[1], [1], [0], [0], [0, 0, 1, 0], [], []>} : vector<16x32xf32>, vector<16x32xf32>, vector<16x16xf32> -> vector<16x16xf32>
    %cst_7 = arith.constant dense<0.000000e+00> : vector<16x16xf32>
    %14 = tpu.matmul %12, %11, %cst_7 {dimension_numbers = #tpu.dot_dimension_numbers<[1], [1], [0], [0], [0, 0, 1, 0], [], []>} : vector<16x32xf32>, vector<16x32xf32>, vector<16x16xf32> -> vector<16x16xf32>
    %15 = arith.subf %13, %14 : vector<16x16xf32>
    %cst_8 = arith.constant 3.000000e+00 : f32
    %16 = vector.broadcast %cst_8 : f32 to vector<16x16xf32>
    %17 = arith.mulf %16, %15 : vector<16x16xf32>
    %18 = math.tanh %17 : vector<16x16xf32>
    %cst_9 = arith.constant 0.000000e+00 : f32
    %19 = vector.broadcast %cst_9 : f32 to vector<16x16xf32>
    %20 = arith.maximumf %18, %19 : vector<16x16xf32>
    %c0_10 = arith.constant 0 : index
    %c0_11 = arith.constant 0 : index
    %c0_12 = arith.constant 0 : index
    %21 = vector.load %arg1[%c0_10, %c0_11, %c0_12] : memref<2x16x16xf32, #tpu.memory_space<vmem>>, vector<1x16x16xf32>
    %22 = vector.shape_cast %21 : vector<1x16x16xf32> to vector<16x16xf32>
    %cst_13 = arith.constant 0.00999999977 : f32
    %23 = vector.broadcast %cst_13 : f32 to vector<16x16xf32>
    %24 = arith.mulf %23, %22 : vector<16x16xf32>
    %25 = arith.addf %20, %24 : vector<16x16xf32>
    %cst_14 = arith.constant dense<0xFF800000> : vector<16xf32>
    %26 = vector.multi_reduction <maximumf>, %25, %cst_14 [1] : vector<16x16xf32> to vector<16xf32>
    %27 = vector.shape_cast %26 : vector<16xf32> to vector<16x1xf32>
    %28 = vector.broadcast %27 : vector<16x1xf32> to vector<16x16xf32>
    %29 = arith.cmpf oge, %25, %28 : vector<16x16xf32>
    %cst_15 = arith.constant 0xFF800000 : f32
    %30 = vector.broadcast %cst_15 : f32 to vector<16x16xf32>
    %31 = arith.select %29, %30, %25 : vector<16x16xi1>, vector<16x16xf32>
    %cst_16 = arith.constant dense<0xFF800000> : vector<16xf32>
    %32 = vector.multi_reduction <maximumf>, %31, %cst_16 [1] : vector<16x16xf32> to vector<16xf32>
    %33 = vector.shape_cast %32 : vector<16xf32> to vector<16x1xf32>
    %34 = vector.broadcast %33 : vector<16x1xf32> to vector<16x16xf32>
    %35 = arith.cmpf oge, %31, %34 : vector<16x16xf32>
    %cst_17 = arith.constant 0xFF800000 : f32
    %36 = vector.broadcast %cst_17 : f32 to vector<16x16xf32>
    %37 = arith.select %35, %36, %31 : vector<16x16xi1>, vector<16x16xf32>
    %cst_18 = arith.constant dense<0xFF800000> : vector<16xf32>
    %38 = vector.multi_reduction <maximumf>, %37, %cst_18 [1] : vector<16x16xf32> to vector<16xf32>
    %39 = vector.shape_cast %38 : vector<16xf32> to vector<16x1xf32>
    %40 = vector.broadcast %39 : vector<16x1xf32> to vector<16x16xf32>
    %41 = arith.cmpf oge, %37, %40 : vector<16x16xf32>
    %cst_19 = arith.constant 0xFF800000 : f32
    %42 = vector.broadcast %cst_19 : f32 to vector<16x16xf32>
    %43 = arith.select %41, %42, %37 : vector<16x16xi1>, vector<16x16xf32>
    %cst_20 = arith.constant dense<0xFF800000> : vector<16xf32>
    %44 = vector.multi_reduction <maximumf>, %43, %cst_20 [1] : vector<16x16xf32> to vector<16xf32>
    %45 = vector.shape_cast %44 : vector<16xf32> to vector<16x1xf32>
    %46 = vector.broadcast %45 : vector<16x1xf32> to vector<16x16xf32>
    %47 = arith.cmpf oge, %25, %46 : vector<16x16xf32>
    %cst_21 = arith.constant 0.000000e+00 : f32
    %48 = vector.broadcast %cst_21 : f32 to vector<16x16xf32>
    %49 = arith.select %47, %20, %48 : vector<16x16xi1>, vector<16x16xf32>
    %c0_22 = arith.constant 0 : index
    %c0_23 = arith.constant 0 : index
    %c0_24 = arith.constant 0 : index
    %50 = vector.load %arg4[%c0_22, %c0_23, %c0_24] : memref<2x16x16xf32, #tpu.memory_space<vmem>>, vector<1x16x16xf32>
    %51 = vector.shape_cast %50 : vector<1x16x16xf32> to vector<16x16xf32>
    %52 = vector.shape_cast %49 : vector<16x16xf32> to vector<1x16x16xf32>
    tpu.vector_store %arg4[%c0_22, %c0_23, %c0_24], %52 {strides = array<i32>} : memref<2x16x16xf32, #tpu.memory_space<vmem>>, vector<1x16x16xf32>,
    %53 = vector.extract_strided_slice %9 {offsets = [16, 0], sizes = [16, 32], strides = [1, 1]} : vector<32x32xf32> to vector<16x32xf32>
    %54 = vector.extract_strided_slice %10 {offsets = [16, 0], sizes = [16, 32], strides = [1, 1]} : vector<32x32xf32> to vector<16x32xf32>
    %cst_25 = arith.constant dense<0.000000e+00> : vector<16x16xf32>
    %55 = tpu.matmul %53, %54, %cst_25 {dimension_numbers = #tpu.dot_dimension_numbers<[1], [1], [0], [0], [0, 0, 1, 0], [], []>} : vector<16x32xf32>, vector<16x32xf32>, vector<16x16xf32> -> vector<16x16xf32>
    %cst_26 = arith.constant dense<0.000000e+00> : vector<16x16xf32>
    %56 = tpu.matmul %54, %53, %cst_26 {dimension_numbers = #tpu.dot_dimension_numbers<[1], [1], [0], [0], [0, 0, 1, 0], [], []>} : vector<16x32xf32>, vector<16x32xf32>, vector<16x16xf32> -> vector<16x16xf32>
    %57 = arith.subf %55, %56 : vector<16x16xf32>
    %cst_27 = arith.constant 3.000000e+00 : f32
    %58 = vector.broadcast %cst_27 : f32 to vector<16x16xf32>
    %59 = arith.mulf %58, %57 : vector<16x16xf32>
    %60 = math.tanh %59 : vector<16x16xf32>
    %cst_28 = arith.constant 0.000000e+00 : f32
    %61 = vector.broadcast %cst_28 : f32 to vector<16x16xf32>
    %62 = arith.maximumf %60, %61 : vector<16x16xf32>
    %c1 = arith.constant 1 : index
    %c0_29 = arith.constant 0 : index
    %c0_30 = arith.constant 0 : index
    %63 = vector.load %arg1[%c1, %c0_29, %c0_30] : memref<2x16x16xf32, #tpu.memory_space<vmem>>, vector<1x16x16xf32>
    %64 = vector.shape_cast %63 : vector<1x16x16xf32> to vector<16x16xf32>
    %cst_31 = arith.constant 0.00999999977 : f32
    %65 = vector.broadcast %cst_31 : f32 to vector<16x16xf32>
    %66 = arith.mulf %65, %64 : vector<16x16xf32>
    %67 = arith.addf %62, %66 : vector<16x16xf32>
    %cst_32 = arith.constant dense<0xFF800000> : vector<16xf32>
    %68 = vector.multi_reduction <maximumf>, %67, %cst_32 [1] : vector<16x16xf32> to vector<16xf32>
    %69 = vector.shape_cast %68 : vector<16xf32> to vector<16x1xf32>
    %70 = vector.broadcast %69 : vector<16x1xf32> to vector<16x16xf32>
    %71 = arith.cmpf oge, %67, %70 : vector<16x16xf32>
    %cst_33 = arith.constant 0xFF800000 : f32
    %72 = vector.broadcast %cst_33 : f32 to vector<16x16xf32>
    %73 = arith.select %71, %72, %67 : vector<16x16xi1>, vector<16x16xf32>
    %cst_34 = arith.constant dense<0xFF800000> : vector<16xf32>
    %74 = vector.multi_reduction <maximumf>, %73, %cst_34 [1] : vector<16x16xf32> to vector<16xf32>
    %75 = vector.shape_cast %74 : vector<16xf32> to vector<16x1xf32>
    %76 = vector.broadcast %75 : vector<16x1xf32> to vector<16x16xf32>
    %77 = arith.cmpf oge, %73, %76 : vector<16x16xf32>
    %cst_35 = arith.constant 0xFF800000 : f32
    %78 = vector.broadcast %cst_35 : f32 to vector<16x16xf32>
    %79 = arith.select %77, %78, %73 : vector<16x16xi1>, vector<16x16xf32>
    %cst_36 = arith.constant dense<0xFF800000> : vector<16xf32>
    %80 = vector.multi_reduction <maximumf>, %79, %cst_36 [1] : vector<16x16xf32> to vector<16xf32>
    %81 = vector.shape_cast %80 : vector<16xf32> to vector<16x1xf32>
    %82 = vector.broadcast %81 : vector<16x1xf32> to vector<16x16xf32>
    %83 = arith.cmpf oge, %79, %82 : vector<16x16xf32>
    %cst_37 = arith.constant 0xFF800000 : f32
    %84 = vector.broadcast %cst_37 : f32 to vector<16x16xf32>
    %85 = arith.select %83, %84, %79 : vector<16x16xi1>, vector<16x16xf32>
    %cst_38 = arith.constant dense<0xFF800000> : vector<16xf32>
    %86 = vector.multi_reduction <maximumf>, %85, %cst_38 [1] : vector<16x16xf32> to vector<16xf32>
    %87 = vector.shape_cast %86 : vector<16xf32> to vector<16x1xf32>
    %88 = vector.broadcast %87 : vector<16x1xf32> to vector<16x16xf32>
    %89 = arith.cmpf oge, %67, %88 : vector<16x16xf32>
    %cst_39 = arith.constant 0.000000e+00 : f32
    %90 = vector.broadcast %cst_39 : f32 to vector<16x16xf32>
    %91 = arith.select %89, %62, %90 : vector<16x16xi1>, vector<16x16xf32>
    %c1_40 = arith.constant 1 : index
    %c0_41 = arith.constant 0 : index
    %c0_42 = arith.constant 0 : index
    %92 = vector.load %arg4[%c1_40, %c0_41, %c0_42] : memref<2x16x16xf32, #tpu.memory_space<vmem>>, vector<1x16x16xf32>
    %93 = vector.shape_cast %92 : vector<1x16x16xf32> to vector<16x16xf32>
    %94 = vector.shape_cast %91 : vector<16x16xf32> to vector<1x16x16xf32>
    tpu.vector_store %arg4[%c1_40, %c0_41, %c0_42], %94 {strides = array<i32>} : memref<2x16x16xf32, #tpu.memory_space<vmem>>, vector<1x16x16xf32>,
    return
  }
}

</mosaic_0001>

<bundles_post_ra>
// kernel: tpu_custom_call.1
= control target key start
LH: loop header
LB: loop body
LE: loop exit
PB: predicated region body
PF: predicated region fallthrough
CT: control target
= control target key end

     0   :  { %9 = vsyncpa [#allocation3], 0  ;;  %s687_s0 = inlined_call_operand.hbm [shape: f32[32,32], index: 0, kind: input, shape index: {}]   ;;  %s688_s1 = inlined_call_operand.hbm [shape: f32[2,16,16], index: 1, kind: input, shape index: {}]   ;;  %s689_s2 = inlined_call_operand.hbm [shape: f32[32,64], index: 2, kind: input, shape index: {}]   ;;  %s690_s3 = inlined_call_operand.vmem [shape: f32[1,64], index: 3, kind: input, shape index: {}]   ;;  %s691_s4 = inlined_call_operand.hbm [shape: f32[2,16,16], index: 4, kind: output, shape index: {}]  }
   0x1   :  { %10 = vsyncpa [#allocation6], 0 }
   0x2   :  { %11 = vsyncpa [#allocation4], 0  ;;  %s29_s17 = sshll.u32 %s688_s1, 4  ;;  %s534_s18 = smov [#allocation5]   ;;  %s30_s17 = int_to_ptr.hbm [resolvable:$true] %s29_s17 }
   0x3   :  { %s31_s19 = sshll.u32 %s534_s18, 4  ;;  %s16_s22 = sshll.u32 %s687_s0, 4  ;;  %s32_s19 = int_to_ptr.vmem [resolvable:$true] %s31_s19  ;;  %s17_s22 = int_to_ptr.hbm [resolvable:$true] %s16_s22 }
   0x4   :  { %s535_s23 = smov 128   ;;  %s536_s24 = smov 8  }
   0x5   :  { %37 = dma.hbm_to_vmem [thread:$0]  %s30_s17, 512, %s32_s19, [#allocation6], %s535_s23, %s535_s23, %s536_s24  }
   0x6   :  { %s537_s25 = smov [#allocation2]   ;;  %s42_s1 = sshll.u32 %s689_s2, 4  ;;  %s43_s1 = int_to_ptr.hbm [resolvable:$true] %s42_s1 }
   0x7   :  { %s18_s26 = sshll.u32 %s537_s25, 4  ;;  %s538_s0 = smov [#allocation7]   ;;  %s19_s26 = int_to_ptr.vmem [resolvable:$true] %s18_s26 }
   0x8   :  { %24 = dma.hbm_to_vmem [thread:$0]  %s17_s22, 512, %s19_s26, [#allocation3], %s535_s23, %s535_s23, %s536_s24  }
   0x9   :  { %s44_s29 = sshll.u32 %s538_s0, 4  ;;  %s45_s29 = int_to_ptr.vmem [resolvable:$true] %s44_s29 }
   0xa   :  { %50 = dma.hbm_to_vmem [thread:$0]  %s43_s1, 512, %s45_s29, [#allocation6], %s535_s23, %s535_s23, %s536_s24  }
   0xb   :  { %528 = dma.done.wait [#allocation3], 512  }
   0xc   :  { %529 = vsyncadd [#allocation3], 4294966784 }
   0xd   :  { %530 = dma.done.wait [#allocation6], 1024  }
   0xe   :  { %531 = vsyncadd [#allocation6], 4294966272  ;;  %v72_v0 = vld [vmem:[#allocation7 + $0x18] sm:$0xff]  ;;  %v71_v1 = vld [vmem:[#allocation7 + $0x10] sm:$0xff]  ;;  %vm77_vm0 = vcmask 261120   ;;  %s539_s5 = smov 96  }
   0xf   :  { %102 = vmatpush.msra.mxu0 %v72_v0  ;;  %402 = vmatpush.msra.mxu2 %v72_v0  ;;  %v70_v2 = vld [vmem:[#allocation7 + $0x8] sm:$0xff]  ;;  %v69_v3 = vld [vmem:[#allocation7] sm:$0xff]  ;;  %v68_v5 = vld [vmem:[#allocation2 + $0x18] sm:$0xff]  ;;  %vm201_vm1 = vcmask 130048   ;;  %s368_s9 = sshll.u32 %s691_s4, 4  ;;  %s369_s9 = int_to_ptr.hbm [resolvable:$true] %s368_s9 }
  0x10   :  { %v65_v4 = vld [vmem:[#allocation2] sm:$0xff]  ;;  %v66_v6 = vld [vmem:[#allocation2 + $0x8] sm:$0xff]  ;;  %v67_v7 = vld [vmem:[#allocation2 + $0x10] sm:$0xff] }
  0x11   :  { %103 = vmatpush.msra.mxu0 %v71_v1  ;;  %403 = vmatpush.msra.mxu2 %v71_v1  ;;  %v415_v9 = vld [vmem:[%s690_s3] ss:$0 sm:$0xff]  ;;  %v196_v46 = vld [vmem:[#allocation5 + $0x8] sm:$0xff]  ;;  %v313_v48 = vld [vmem:[#allocation5 + $0x10] sm:$0xff]  ;;  %s540_s3 = smov [#allocation8]  }
  0x12   :  { %v195_v34 = vld [vmem:[#allocation5] sm:$0xff]  ;;  %v198_v49 = vmul.f32 0.01, %v196_v46  ;;  %v315_v55 = vmul.f32 0.01, %v313_v48  ;;  %v314_v62 = vld [vmem:[#allocation5 + $0x18] sm:$0xff] }
  0x13   :  { %104 = vmatpush.msra.mxu0 %v70_v2  ;;  %404 = vmatpush.msra.mxu2 %v70_v2  ;;  %v197_v38 = vmul.f32 0.01, %v195_v34  ;;  %v316_v0 = vmul.f32 0.01, %v314_v62  ;;  %s366_s6 = sshll.u32 %s540_s3, 4  ;;  %s367_s6 = int_to_ptr.vmem [resolvable:$true] %s366_s6 }
  0x15   :  { %105 = vmatpush.msra.mxu0 %v69_v3  ;;  %405 = vmatpush.msra.mxu2 %v69_v3 }
  0x16   :  { %382 = vmatmul.msk.f32.vlgmr.msra.gmra.mxu0 %vm77_vm0, %v65_v4  ;;  %385 = vmatmul.msk.f32.vlgmr.msra.gmra.mxu2 %vm77_vm0, %v68_v5 }
  0x1e   :  { %383 = vmatmul.msk.f32.gmra.mxu0 %vm77_vm0, %v66_v6 }
  0x26   :  { %384 = vmatmul.msk.f32.gmra.mxu0 %vm77_vm0, %v67_v7 }
  0x93   :  { %v107_v8 = vpop.f32.mrf.mxu0 }
  0x94   :  { %v108_v13 = vadd.f32 %v415_v9, %v107_v8 }
  0x96   :  { %v119_v17 = vmul.f32 3.0, %v108_v13 }
  0x99   :  { %v116_v10 = vpop.f32.mrf.mxu2 }
  0x9a   :  { %v117_v11 = vadd.f32 %v415_v9, %v116_v10 }
  0x9b   :  { %v110_v12 = vpop.f32.mrf.mxu0 }
  0x9c   :  { %v111_v14 = vadd.f32 %v415_v9, %v110_v12  ;;  %v122_v15 = vmul.f32 3.0, %v117_v11 }
  0x9e   :  { %v120_v16 = vmul.f32 3.0, %v111_v14  ;;  %416 = vtanh.f32 %v122_v15 }
  0xa0   :  { %418 = vtanh.f32 %v120_v16 }
  0xa1   :  { %420 = vtanh.f32 %v119_v17 }
  0xa3   :  { %v113_v18 = vpop.f32.mrf.mxu0 }
  0xa4   :  { %v417_v19 = vpop.eup %416  ;;  %v114_v20 = vadd.f32 %v415_v9, %v113_v18 }
  0xa5   :  { %248 = vrot.lane.b32.xlu1 %v417_v19, %s539_s5 }
  0xa6   :  { %v419_v21 = vpop.eup %418  ;;  %v121_v22 = vmul.f32 3.0, %v114_v20 }
  0xa7   :  { %131 = vrot.lane.b32.xlu0 %v419_v21, %s539_s5  ;;  %390 = vmatpush.xpose.msk.msrb.mxu2 %vm77_vm0, %v419_v21  ;;  %v421_v23 = vpop.eup %420 }
  0xa8   :  { %422 = vtanh.f32 %v121_v22 }
  0xab   :  { %391 = vmatpush.xpose.msk.msrb.mxu2 %vm77_vm0, %v421_v23 }
  0xae   :  { %v423_v24 = vpop.eup %422 }
  0xaf   :  { %129 = vrot.lane.b32.xlu0 %v421_v23, %s539_s5  ;;  %246 = vrot.lane.b32.xlu1 %v423_v24, %s539_s5 }
 0x117   :  { %v249_v26 = vpop.permute.xlu1 %248 }
 0x119   :  { %v132_v25 = vpop.permute.xlu0 %131 }
 0x11a   :  { %386 = vmatpush.xpose.msk.msra.mxu1 %vm77_vm0, %v132_v25  ;;  %406 = vmatpush.xpose.msk.msra.mxu3 %vm77_vm0, %v132_v25 }
 0x121   :  { %v130_v27 = vpop.permute.xlu0 %129  ;;  %v247_v28 = vpop.permute.xlu1 %246 }
 0x122   :  { %387 = vmatpush.xpose.msk.msra.mxu1 %vm77_vm0, %v130_v27  ;;  %407 = vmatpush.xpose.msk.msra.mxu3 %vm77_vm0, %v130_v27 }
 0x123   :  { %392 = vmatmul.msk.f32.vlgmr.msrb.gmra.mxu2 %vm77_vm0, %v130_v27 }
 0x125   :  { %388 = vmatmul.msk.f32.vlgmr.msra.gmra.mxu1 %vm77_vm0, %v421_v23  ;;  %389 = vmatmul.msk.f32.vlgmr.msra.gmra.mxu3 %vm77_vm0, %v419_v21 }
 0x126   :  { %398 = vmatpush.xpose.msk.msrb.mxu1 %vm77_vm0, %v417_v19  ;;  %394 = vmatpush.xpose.msk.msrb.mxu3 %vm77_vm0, %v249_v26 }
 0x12a   :  { %399 = vmatpush.xpose.msk.msrb.mxu1 %vm77_vm0, %v423_v24  ;;  %395 = vmatpush.xpose.msk.msrb.mxu3 %vm77_vm0, %v247_v28 }
 0x12b   :  { %393 = vmatmul.msk.f32.gmra.mxu2 %vm77_vm0, %v132_v25 }
 0x12d   :  { %396 = vmatmul.msk.f32.vlgmr.msrb.gmra.mxu3 %vm77_vm0, %v423_v24  ;;  %400 = vmatmul.msk.f32.vlgmr.msrb.gmra.mxu1 %vm77_vm0, %v247_v28 }
 0x135   :  { %397 = vmatmul.msk.f32.gmra.mxu3 %vm77_vm0, %v417_v19  ;;  %401 = vmatmul.msk.f32.gmra.mxu1 %vm77_vm0, %v249_v26 }
 0x1a2   :  { %v158_v29 = vpop.f32.mrf.mxu1 }
 0x1a6   :  { %v181_v30 = vpop.f32.mrf.mxu2 }
 0x1a7   :  { %v187_v31 = vsub.f32 %v158_v29, %v181_v30 }
 0x1a8   :  { %v161_v32 = vpop.f32.mrf.mxu3 }
 0x1a9   :  { %v189_v33 = vmul.f32 3.0, %v187_v31 }
 0x1aa   :  { %v298_v35 = vpop.f32.mrf.mxu1 }
 0x1ab   :  { %424 = vtanh.f32 %v189_v33 }
 0x1ae   :  { %v184_v36 = vpop.f32.mrf.mxu2 }
 0x1af   :  { %v188_v37 = vsub.f32 %v161_v32, %v184_v36 }
 0x1b0   :  { %v275_v39 = vpop.f32.mrf.mxu3 }
 0x1b1   :  { %v609_v40 = vpop.eup %424  ;;  %v190_v41 = vmul.f32 3.0, %v188_v37  ;;  %v304_v42 = vsub.f32 %v275_v39, %v298_v35 }
 0x1b2   :  { %v193_v43 = vmax.f32 %v609_v40, 0.0  ;;  %v301_v50 = vpop.f32.mrf.mxu1 }
 0x1b3   :  { %426 = vtanh.f32 %v190_v41  ;;  %v306_v44 = vmul.f32 3.0, %v304_v42 }
 0x1b4   :  { %v614_v45 = vadd.f32 %v197_v38, %v193_v43 }
 0x1b5   :  { %428 = vtanh.f32 %v306_v44 }
 0x1b6   :  { %v202_v47 = vsel %vm201_vm1, %v614_v45, -inf }
 0x1b7   :  { %203 = vmax.xlane.f32.xlu2 %v202_v47 }
 0x1b8   :  { %v278_v51 = vpop.f32.mrf.mxu3 }
 0x1b9   :  { %v618_v52 = vpop.eup %426  ;;  %v305_v53 = vsub.f32 %v278_v51, %v301_v50 }
 0x1ba   :  { %v194_v54 = vmax.f32 %v618_v52, 0.0 }
 0x1bb   :  { %v621_v56 = vpop.eup %428  ;;  %v307_v57 = vmul.f32 3.0, %v305_v53 }
 0x1bc   :  { %v625_v58 = vadd.f32 %v198_v49, %v194_v54  ;;  %v310_v59 = vmax.f32 %v621_v56, 0.0 }
 0x1bd   :  { %430 = vtanh.f32 %v307_v57 }
 0x1be   :  { %v630_v60 = vadd.f32 %v315_v55, %v310_v59  ;;  %v205_v61 = vsel %vm201_vm1, %v625_v58, -inf }
 0x1bf   :  { %206 = vmax.xlane.f32.xlu2 %v205_v61 }
 0x1c0   :  { %v319_v63 = vsel %vm201_vm1, %v630_v60, -inf }
 0x1c1   :  { %320 = vmax.xlane.f32.xlu0 %v319_v63 }
 0x1c3   :  { %v636_v1 = vpop.eup %430 }
 0x1c4   :  { %v311_v2 = vmax.f32 %v636_v1, 0.0 }
 0x1c6   :  { %v641_v3 = vadd.f32 %v316_v0, %v311_v2 }
 0x1c8   :  { %v322_v4 = vsel %vm201_vm1, %v641_v3, -inf }
 0x1c9   :  { %323 = vmax.xlane.f32.xlu1 %v322_v4 }
 0x22a   :  { %v204_v5 = vpop.xlane.xlu2 %203 }
 0x22b   :  { %vm208_vm2 = vcmp.ge.f32.partialorder %v614_v45, %v204_v5 }
 0x22c   :  { %v210_v6 = vsel %vm208_vm2, -inf, %v614_v45 }
 0x22d   :  { %v212_v7 = vsel %vm201_vm1, %v210_v6, -inf }
 0x22e   :  { %213 = vmax.xlane.f32.xlu2 %v212_v7 }
 0x232   :  { %v207_v8 = vpop.xlane.xlu2 %206 }
 0x233   :  { %vm209_vm3 = vcmp.ge.f32.partialorder %v625_v58, %v207_v8 }
 0x234   :  { %v211_v9 = vsel %vm209_vm3, -inf, %v625_v58  ;;  %v321_v10 = vpop.xlane.xlu0 %320 }
 0x235   :  { %v215_v11 = vsel %vm201_vm1, %v211_v9, -inf  ;;  %vm325_vm4 = vcmp.ge.f32.partialorder %v630_v60, %v321_v10 }
 0x236   :  { %216 = vmax.xlane.f32.xlu2 %v215_v11  ;;  %v327_v12 = vsel %vm325_vm4, -inf, %v630_v60 }
 0x237   :  { %v329_v14 = vsel %vm201_vm1, %v327_v12, -inf }
 0x23c   :  { %v324_v13 = vpop.xlane.xlu1 %323 }
 0x23d   :  { %vm326_vm5 = vcmp.ge.f32.partialorder %v641_v3, %v324_v13 }
 0x23e   :  { %330 = vmax.xlane.f32.xlu2 %v329_v14  ;;  %v328_v15 = vsel %vm326_vm5, -inf, %v641_v3 }
 0x23f   :  { %v332_v16 = vsel %vm201_vm1, %v328_v15, -inf }
 0x246   :  { %333 = vmax.xlane.f32.xlu2 %v332_v16 }
 0x2a1   :  { %v214_v17 = vpop.xlane.xlu2 %213 }
 0x2a2   :  { %vm218_vm6 = vcmp.ge.f32.partialorder %v210_v6, %v214_v17 }
 0x2a3   :  { %v220_v18 = vsel %vm218_vm6, -inf, %v210_v6 }
 0x2a4   :  { %v222_v19 = vsel %vm201_vm1, %v220_v18, -inf }
 0x2a5   :  { %223 = vmax.xlane.f32.xlu2 %v222_v19 }
 0x2a9   :  { %v217_v20 = vpop.xlane.xlu2 %216 }
 0x2aa   :  { %vm219_vm7 = vcmp.ge.f32.partialorder %v211_v9, %v217_v20 }
 0x2ab   :  { %v221_v21 = vsel %vm219_vm7, -inf, %v211_v9 }
 0x2ac   :  { %v225_v22 = vsel %vm201_vm1, %v221_v21, -inf }
 0x2ad   :  { %226 = vmax.xlane.f32.xlu2 %v225_v22 }
 0x2b1   :  { %v331_v23 = vpop.xlane.xlu2 %330 }
 0x2b2   :  { %vm335_vm8 = vcmp.ge.f32.partialorder %v327_v12, %v331_v23 }
 0x2b3   :  { %v337_v24 = vsel %vm335_vm8, -inf, %v327_v12 }
 0x2b4   :  { %v339_v25 = vsel %vm201_vm1, %v337_v24, -inf }
 0x2b5   :  { %340 = vmax.xlane.f32.xlu0 %v339_v25 }
 0x2b9   :  { %v334_v26 = vpop.xlane.xlu2 %333 }
 0x2ba   :  { %vm336_vm9 = vcmp.ge.f32.partialorder %v328_v15, %v334_v26 }
 0x2bb   :  { %v338_v27 = vsel %vm336_vm9, -inf, %v328_v15 }
 0x2bc   :  { %v342_v28 = vsel %vm201_vm1, %v338_v27, -inf }
 0x2bd   :  { %343 = vmax.xlane.f32.xlu1 %v342_v28 }
 0x318   :  { %v224_v29 = vpop.xlane.xlu2 %223 }
 0x319   :  { %vm228_vm10 = vcmp.ge.f32.partialorder %v220_v18, %v224_v29 }
 0x31a   :  { %v230_v30 = vsel %vm228_vm10, -inf, %v220_v18 }
 0x31b   :  { %v232_v31 = vsel %vm201_vm1, %v230_v30, -inf }
 0x31c   :  { %233 = vmax.xlane.f32.xlu2 %v232_v31 }
 0x320   :  { %v227_v32 = vpop.xlane.xlu2 %226 }
 0x321   :  { %vm229_vm11 = vcmp.ge.f32.partialorder %v221_v21, %v227_v32 }
 0x322   :  { %v231_v33 = vsel %vm229_vm11, -inf, %v221_v21 }
 0x323   :  { %v235_v34 = vsel %vm201_vm1, %v231_v33, -inf }
 0x324   :  { %236 = vmax.xlane.f32.xlu0 %v235_v34 }
 0x328   :  { %v341_v35 = vpop.xlane.xlu0 %340 }
 0x329   :  { %vm345_vm12 = vcmp.ge.f32.partialorder %v337_v24, %v341_v35 }
 0x32a   :  { %v347_v36 = vsel %vm345_vm12, -inf, %v337_v24 }
 0x32b   :  { %v349_v37 = vsel %vm201_vm1, %v347_v36, -inf }
 0x32c   :  { %350 = vmax.xlane.f32.xlu1 %v349_v37 }
 0x330   :  { %v344_v38 = vpop.xlane.xlu1 %343 }
 0x331   :  { %vm346_vm13 = vcmp.ge.f32.partialorder %v338_v27, %v344_v38 }
 0x332   :  { %v348_v39 = vsel %vm346_vm13, -inf, %v338_v27 }
 0x333   :  { %v352_v41 = vsel %vm201_vm1, %v348_v39, -inf }
 0x334   :  { %353 = vmax.xlane.f32.xlu2 %v352_v41 }
 0x38f   :  { %v234_v42 = vpop.xlane.xlu2 %233 }
 0x390   :  { %vm238_vm14 = vcmp.ge.f32.partialorder %v614_v45, %v234_v42 }
 0x391   :  { %v240_v44 = vsel %vm238_vm14, %v193_v43, 0.0 }
 0x392   :  { %242 = vst.msk [vmem:[#allocation8] sm:$0xff] %vm201_vm1, %v240_v44 }
 0x397   :  { %v237_v46 = vpop.xlane.xlu0 %236 }
 0x398   :  { %vm239_vm15 = vcmp.ge.f32.partialorder %v625_v58, %v237_v46 }
 0x399   :  { %v241_v47 = vsel %vm239_vm15, %v194_v54, 0.0 }
 0x39a   :  { %243 = vst.msk [vmem:[#allocation8 + $0x8] sm:$0xff] %vm201_vm1, %v241_v47 }
 0x39f   :  { %v351_v48 = vpop.xlane.xlu1 %350 }
 0x3a0   :  { %vm355_vm0 = vcmp.ge.f32.partialorder %v630_v60, %v351_v48 }
 0x3a1   :  { %v357_v49 = vsel %vm355_vm0, %v310_v59, 0.0 }
 0x3a2   :  { %360 = vst.msk [vmem:[#allocation8 + $0x10] sm:$0xff] %vm201_vm1, %v357_v49 }
 0x3a7   :  { %v354_v40 = vpop.xlane.xlu2 %353 }
 0x3a8   :  { %vm356_vm2 = vcmp.ge.f32.partialorder %v641_v3, %v354_v40 }
 0x3a9   :  { %v358_v43 = vsel %vm356_vm2, %v311_v2, 0.0 }
 0x3aa   :  { %361 = vst.msk [vmem:[#allocation8 + $0x18] sm:$0xff] %vm201_vm1, %v358_v43 }
 0x3ab   :  { %374 = dma.vmem_to_hbm [thread:$0]  %s367_s6, 512, %s369_s9, [#allocation4], %s535_s23, %s535_s23, %s536_s24  }
 0x3ac   :  { %532 = dma.done.wait [#allocation4], 512  }
 0x3ad   :  { %533 = vsyncadd [#allocation4], 4294966784 }
 0x3ae   :  { %379 = vsyncpa [#allocation3], 1 }
 0x3af   :  { %380 = vsyncpa [#allocation6], 1 }
 0x3b0   :  { %381 = vsyncpa [#allocation4], 1 }

</bundles_post_ra>
